<compile_context>
chip_gen: v7x
topology: tpu7x:2x2x1
jax: 0.10.0
libtpu: 0.0.40
codegen_flags: <defaults>
</compile_context>

<pallas_src>
import math

import jax
import jax.numpy as jnp
from jax import lax
from jax.experimental import pallas as pl
from jax.experimental.pallas import tpu as pltpu


def _make_kernel(h, q_dim, v_dim, batch_block, mxu_dtype):
    """Kernel body.  Weights arrive fused + pre-cast; scale folded into W_q;
    V bias folded into the output bias."""

    def kernel(xq_ref, xk_ref, xv_ref,
               wq_ref, bq_ref, wk_ref, bk_ref, wv_ref, wo_ref, bo_ref,
               o_ref):
        # Hoist weight loads out of the batch loop (already in mxu_dtype).
        wq = wq_ref[...]          # (d_model, h*q), 1/sqrt(q) folded
        wk = wk_ref[...]          # (d_model, h*q)
        wv = wv_ref[...]          # (d_model, h*v)
        wo = wo_ref[...]          # (h*v, d_model)
        bq = bq_ref[...]          # (1, h*q) f32, scaled
        bk = bk_ref[...]          # (1, h*q) f32
        bo = bo_ref[...]          # (1, d_model) f32, includes folded bv @ Wo

        for b in range(batch_block):                 # static, small -> unrolled
            xq = xq_ref[b].astype(mxu_dtype)          # (T, d_model)
            xk = xk_ref[b].astype(mxu_dtype)
            xv = xv_ref[b].astype(mxu_dtype)

            # Fused full-width projections (one MXU pass per operand).
            q_all = jnp.dot(xq, wq, preferred_element_type=jnp.float32) + bq  # (T, h*q)
            k_all = jnp.dot(xk, wk, preferred_element_type=jnp.float32) + bk  # (T, h*q)
            v_all = jnp.dot(xv, wv, preferred_element_type=jnp.float32)       # (T, h*v)

            # Per-head softmax(QK^T)V; heads collected into one (T, h*v) slab.
            # TODO(synk): move heads / KV blocks onto grid axes with scratch
            # accumulators once T is large (bounds vreg liveness + VMEM).
            heads = []
            for i in range(h):                       # static, small -> unrolled
                qi = q_all[:, i * q_dim:(i + 1) * q_dim].astype(mxu_dtype)
                ki = k_all[:, i * q_dim:(i + 1) * q_dim].astype(mxu_dtype)
                vi = v_all[:, i * v_dim:(i + 1) * v_dim].astype(mxu_dtype)

                # Scores: contract last dims of both operands (no explicit K.T).
                s = lax.dot_general(qi, ki, (((1,), (1,)), ((), ())),
                                    preferred_element_type=jnp.float32)  # (T, T)

                # Numerically stable softmax in f32; reciprocal on the EUP.
                s = s - jnp.max(s, axis=-1, keepdims=True)
                p = jnp.exp(s)
                p = p * pl.reciprocal(jnp.sum(p, axis=-1, keepdims=True),
                                      approx=True)

                heads.append(jnp.dot(p.astype(mxu_dtype), vi,
                                     preferred_element_type=jnp.float32))  # (T, v)

            attn = jnp.concatenate(heads, axis=-1).astype(mxu_dtype)      # (T, h*v)

            # Single fused output projection over all heads.
            out = jnp.dot(attn, wo, preferred_element_type=jnp.float32) + bo
            o_ref[b] = out.astype(o_ref.dtype)

    return kernel


def prepare_params(params, *, q_dim, v_dim, h, mxu_dtype):
    """PyTorch-layout linears -> fused kernel layout, pre-cast to the MXU dtype,
    with 1/sqrt(q) folded into W_q/b_q and bv folded into the output bias."""
    del v_dim, h  # layouts are already head-concatenated along the last dim
    wq, bq, wk, bk, wv, bv, wo, bo = params
    scale = 1.0 / math.sqrt(q_dim)

    wq_s = (wq * scale).astype(mxu_dtype)            # (d_model, h*q)
    bq_s = (bq * scale).reshape(1, -1).astype(jnp.float32)
    wk_c = wk.astype(mxu_dtype)                      # (d_model, h*q)
    bk_c = bk.reshape(1, -1).astype(jnp.float32)
    wv_c = wv.astype(mxu_dtype)                      # (d_model, h*v)
    wo_c = wo.astype(mxu_dtype)                      # (h*v, d_model)
    # softmax rows sum to 1  =>  p @ (x Wv + bv) @ Wo + bo == p @ (x Wv) @ Wo + (bo + bv @ Wo)
    bo_eff = (bo + bv @ wo).reshape(1, -1).astype(jnp.float32)
    return wq_s, bq_s, wk_c, bk_c, wv_c, wo_c, bo_eff


def _vmem_limit_bytes(batch_block, T, d_model, h, q_dim, v_dim, weight_arrays):
    x_blocks = 3 * batch_block * T * d_model * 4 * 2          # q/k/v, double-buffered
    o_blocks = batch_block * T * d_model * 4 * 2
    w_bytes = 2 * sum(int(a.size) * a.dtype.itemsize for a in weight_arrays)
    # f32 live intermediates per batch element: Q/K/V slabs, score tile, attn, out.
    scratch = batch_block * 4 * (2 * T * h * q_dim + 2 * T * h * v_dim
                                 + T * T + T * d_model)
    est = x_blocks + o_blocks + w_bytes + 4 * scratch
    return int(min(max(2 * est, 8 << 20), 64 << 20))


def multi_head_attention(query, key, value, params, *, q_dim, v_dim, h,
                         batch_block=1, mxu_dtype=jnp.bfloat16):
    """query/key/value: (B, T, d_model) float32. Returns (B, T, d_model) float32."""
    B, T, d_model = query.shape
    assert B % batch_block == 0, "batch must be divisible by batch_block"

    prepped = prepare_params(params, q_dim=q_dim, v_dim=v_dim, h=h,
                             mxu_dtype=mxu_dtype)

    xspec = pl.BlockSpec((batch_block, T, d_model), lambda b: (b, 0, 0))
    # Grid-invariant index maps -> Pallas DMAs each weight once.
    wspec = lambda a: pl.BlockSpec(a.shape, lambda b: (0,) * a.ndim)

    kernel = _make_kernel(h, q_dim, v_dim, batch_block, mxu_dtype)

    return pl.pallas_call(
        kernel,
        out_shape=jax.ShapeDtypeStruct((B, T, d_model), jnp.float32),
        grid_spec=pltpu.PrefetchScalarGridSpec(
            num_scalar_prefetch=0,
            grid=(B // batch_block,),
            in_specs=[xspec, xspec, xspec] + [wspec(a) for a in prepped],
            out_specs=pl.BlockSpec((batch_block, T, d_model), lambda b: (b, 0, 0)),
        ),
        compiler_params=pltpu.CompilerParams(
            dimension_semantics=("parallel",),
            vmem_limit_bytes=_vmem_limit_bytes(batch_block, T, d_model, h,
                                               q_dim, v_dim, prepped)),
    )(query, key, value, *prepped)


def reference_mha(query, key, value, params, *, q_dim, v_dim, h):
    """Pure-JAX reference mirroring the PyTorch forward exactly."""
    wq, bq, wk, bk, wv, bv, wo, bo = params
    Q = query @ wq + bq            # (B, T, q*h)
    K = key @ wk + bk
    V = value @ wv + bv
    # torch.cat(x.chunk(h, dim=-1), dim=0)
    Qh = jnp.concatenate(jnp.split(Q, h, axis=-1), axis=0)   # (h*B, T, q)
    Kh = jnp.concatenate(jnp.split(K, h, axis=-1), axis=0)
    Vh = jnp.concatenate(jnp.split(V, h, axis=-1), axis=0)
    scores = jnp.einsum('btq,bsq->bts', Qh, Kh) / math.sqrt(q_dim)
    scores = jax.nn.softmax(scores, axis=-1)
    attn = jnp.einsum('bts,bsv->btv', scores, Vh)             # (h*B, T, v)
    attn_heads = jnp.concatenate(jnp.split(attn, h, axis=0), axis=-1)  # (B, T, v*h)
    return attn_heads @ wo + bo


if __name__ == "__main__":
    # Small shapes consistent with the module.
    B, T, d_model = 2, 8, 32
    q_dim, v_dim, h = 8, 8, 4

    key0 = jax.random.PRNGKey(0)
    ks = jax.random.split(key0, 11)

    # Deterministic synthetic parameters, stored as (in, out) == PyTorch weight.T.
    def lin(kw, kb, din, dout):
        w = jax.random.normal(kw, (din, dout), jnp.float32) * (1.0 / math.sqrt(din))
        b = jax.random.normal(kb, (1, dout), jnp.float32) * 0.01
        return w, b

    wq, bq = lin(ks[0], ks[1], d_model, q_dim * h)
    wk, bk = lin(ks[2], ks[3], d_model, q_dim * h)
    wv, bv = lin(ks[4], ks[5], d_model, v_dim * h)
    wo, bo = lin(ks[6], ks[7], v_dim * h, d_model)
    params = (wq, bq, wk, bk, wv, bv, wo, bo)

    query = jax.random.normal(ks[8], (B, T, d_model), jnp.float32)
    keyx = jax.random.normal(ks[9], (B, T, d_model), jnp.float32)
    value = jax.random.normal(ks[10], (B, T, d_model), jnp.float32)

    ref = reference_mha(query, keyx, value, params, q_dim=q_dim, v_dim=v_dim, h=h)

    # f32 MXU operands; grid extent 2 (batch_block=1) keeps both v7x TCs busy.
    out_f32 = jax.block_until_ready(
        multi_head_attention(query, keyx, value, params, q_dim=q_dim, v_dim=v_dim,
                             h=h, batch_block=1, mxu_dtype=jnp.float32))
    assert out_f32.shape == (B, T, d_model)
    assert jnp.allclose(out_f32, ref, atol=5e-3, rtol=5e-3), "f32 kernel mismatch"

    # Default path: bf16 MXU operands, f32 accumulation + f32 softmax.
    out_bf16 = jax.block_until_ready(
        multi_head_attention(query, keyx, value, params, q_dim=q_dim, v_dim=v_dim,
                             h=h, batch_block=1))
    assert out_bf16.shape == (B, T, d_model)
    assert jnp.allclose(out_bf16, ref, atol=5e-2, rtol=5e-2), "bf16 kernel mismatch"

    print("KERNEL_OK")
</pallas_src>

<mosaic_0001>
module attributes {stable_mosaic.version = 11 : i64} {
  func.func @kernel(%arg0: i32, %arg1: memref<1x8x32xf32, #tpu.memory_space<vmem>>, %arg2: memref<1x8x32xf32, #tpu.memory_space<vmem>>, %arg3: memref<1x8x32xf32, #tpu.memory_space<vmem>>, %arg4: memref<32x32xf32, #tpu.memory_space<vmem>>, %arg5: memref<1x32xf32, #tpu.memory_space<vmem>>, %arg6: memref<32x32xf32, #tpu.memory_space<vmem>>, %arg7: memref<1x32xf32, #tpu.memory_space<vmem>>, %arg8: memref<32x32xf32, #tpu.memory_space<vmem>>, %arg9: memref<32x32xf32, #tpu.memory_space<vmem>>, %arg10: memref<1x32xf32, #tpu.memory_space<vmem>>, %arg11: memref<1x8x32xf32, #tpu.memory_space<vmem>>) attributes {dimension_semantics = [#tpu.dimension_semantics<parallel>], iteration_bounds = array<i64: 2>, scalar_prefetch = 0 : i64, scratch_operands = 0 : i64, tpu.core_type = #tpu.core_type<tc>, window_params = [{transform_indices = @transform_0, window_bounds = array<i64: 1, 8, 32>}, {transform_indices = @transform_1, window_bounds = array<i64: 1, 8, 32>}, {transform_indices = @transform_2, window_bounds = array<i64: 1, 8, 32>}, {pipeline_mode = #tpu.pipeline_mode<synchronous>, transform_indices = @transform_3, window_bounds = array<i64: 32, 32>}, {pipeline_mode = #tpu.pipeline_mode<synchronous>, transform_indices = @transform_4, window_bounds = array<i64: 1, 32>}, {pipeline_mode = #tpu.pipeline_mode<synchronous>, transform_indices = @transform_5, window_bounds = array<i64: 32, 32>}, {pipeline_mode = #tpu.pipeline_mode<synchronous>, transform_indices = @transform_6, window_bounds = array<i64: 1, 32>}, {pipeline_mode = #tpu.pipeline_mode<synchronous>, transform_indices = @transform_7, window_bounds = array<i64: 32, 32>}, {pipeline_mode = #tpu.pipeline_mode<synchronous>, transform_indices = @transform_8, window_bounds = array<i64: 32, 32>}, {pipeline_mode = #tpu.pipeline_mode<synchronous>, transform_indices = @transform_9, window_bounds = array<i64: 1, 32>}, {transform_indices = @transform_10, window_bounds = array<i64: 1, 8, 32>}]} {
    %c0 = arith.constant 0 : index
    %c0_0 = arith.constant 0 : index
    %0 = vector.load %arg4[%c0, %c0_0] : memref<32x32xf32, #tpu.memory_space<vmem>>, vector<32x32xf32>
    %c0_1 = arith.constant 0 : index
    %c0_2 = arith.constant 0 : index
    %1 = vector.load %arg6[%c0_1, %c0_2] : memref<32x32xf32, #tpu.memory_space<vmem>>, vector<32x32xf32>
    %c0_3 = arith.constant 0 : index
    %c0_4 = arith.constant 0 : index
    %2 = vector.load %arg8[%c0_3, %c0_4] : memref<32x32xf32, #tpu.memory_space<vmem>>, vector<32x32xf32>
    %c0_5 = arith.constant 0 : index
    %c0_6 = arith.constant 0 : index
    %3 = vector.load %arg9[%c0_5, %c0_6] : memref<32x32xf32, #tpu.memory_space<vmem>>, vector<32x32xf32>
    %c0_7 = arith.constant 0 : index
    %c0_8 = arith.constant 0 : index
    %4 = vector.load %arg5[%c0_7, %c0_8] : memref<1x32xf32, #tpu.memory_space<vmem>>, vector<1x32xf32>
    %c0_9 = arith.constant 0 : index
    %c0_10 = arith.constant 0 : index
    %5 = vector.load %arg7[%c0_9, %c0_10] : memref<1x32xf32, #tpu.memory_space<vmem>>, vector<1x32xf32>
    %c0_11 = arith.constant 0 : index
    %c0_12 = arith.constant 0 : index
    %6 = vector.load %arg10[%c0_11, %c0_12] : memref<1x32xf32, #tpu.memory_space<vmem>>, vector<1x32xf32>
    %c0_13 = arith.constant 0 : index
    %c0_14 = arith.constant 0 : index
    %c0_15 = arith.constant 0 : index
    %7 = vector.load %arg1[%c0_13, %c0_14, %c0_15] : memref<1x8x32xf32, #tpu.memory_space<vmem>>, vector<1x8x32xf32>
    %8 = vector.shape_cast %7 : vector<1x8x32xf32> to vector<8x32xf32>
    %c0_16 = arith.constant 0 : index
    %c0_17 = arith.constant 0 : index
    %c0_18 = arith.constant 0 : index
    %9 = vector.load %arg2[%c0_16, %c0_17, %c0_18] : memref<1x8x32xf32, #tpu.memory_space<vmem>>, vector<1x8x32xf32>
    %10 = vector.shape_cast %9 : vector<1x8x32xf32> to vector<8x32xf32>
    %c0_19 = arith.constant 0 : index
    %c0_20 = arith.constant 0 : index
    %c0_21 = arith.constant 0 : index
    %11 = vector.load %arg3[%c0_19, %c0_20, %c0_21] : memref<1x8x32xf32, #tpu.memory_space<vmem>>, vector<1x8x32xf32>
    %12 = vector.shape_cast %11 : vector<1x8x32xf32> to vector<8x32xf32>
    %cst = arith.constant dense<0.000000e+00> : vector<8x32xf32>
    %13 = tpu.matmul %8, %0, %cst {dimension_numbers = #tpu.dot_dimension_numbers<[1], [0], [0], [1], [0, 0, 1, 1], [], []>} : vector<8x32xf32>, vector<32x32xf32>, vector<8x32xf32> -> vector<8x32xf32>
    %14 = vector.broadcast %4 : vector<1x32xf32> to vector<8x32xf32>
    %15 = arith.addf %13, %14 : vector<8x32xf32>
    %cst_22 = arith.constant dense<0.000000e+00> : vector<8x32xf32>
    %16 = tpu.matmul %10, %1, %cst_22 {dimension_numbers = #tpu.dot_dimension_numbers<[1], [0], [0], [1], [0, 0, 1, 1], [], []>} : vector<8x32xf32>, vector<32x32xf32>, vector<8x32xf32> -> vector<8x32xf32>
    %17 = vector.broadcast %5 : vector<1x32xf32> to vector<8x32xf32>
    %18 = arith.addf %16, %17 : vector<8x32xf32>
    %cst_23 = arith.constant dense<0.000000e+00> : vector<8x32xf32>
    %19 = tpu.matmul %12, %2, %cst_23 {dimension_numbers = #tpu.dot_dimension_numbers<[1], [0], [0], [1], [0, 0, 1, 1], [], []>} : vector<8x32xf32>, vector<32x32xf32>, vector<8x32xf32> -> vector<8x32xf32>
    %20 = vector.extract_strided_slice %15 {offsets = [0, 0], sizes = [8, 8], strides = [1, 1]} : vector<8x32xf32> to vector<8x8xf32>
    %21 = vector.extract_strided_slice %18 {offsets = [0, 0], sizes = [8, 8], strides = [1, 1]} : vector<8x32xf32> to vector<8x8xf32>
    %22 = vector.extract_strided_slice %19 {offsets = [0, 0], sizes = [8, 8], strides = [1, 1]} : vector<8x32xf32> to vector<8x8xf32>
    %cst_24 = arith.constant dense<0.000000e+00> : vector<8x8xf32>
    %23 = tpu.matmul %20, %21, %cst_24 {dimension_numbers = #tpu.dot_dimension_numbers<[1], [1], [0], [0], [0, 0, 1, 0], [], []>} : vector<8x8xf32>, vector<8x8xf32>, vector<8x8xf32> -> vector<8x8xf32>
    %cst_25 = arith.constant dense<0xFF800000> : vector<8xf32>
    %24 = vector.multi_reduction <maximumf>, %23, %cst_25 [1] : vector<8x8xf32> to vector<8xf32>
    %25 = vector.shape_cast %24 : vector<8xf32> to vector<8x1xf32>
    %26 = vector.broadcast %25 : vector<8x1xf32> to vector<8x8xf32>
    %27 = arith.subf %23, %26 : vector<8x8xf32>
    %28 = math.exp %27 : vector<8x8xf32>
    %cst_26 = arith.constant dense<0.000000e+00> : vector<8xf32>
    %29 = vector.multi_reduction <add>, %28, %cst_26 [1] : vector<8x8xf32> to vector<8xf32>
    %30 = vector.shape_cast %29 : vector<8xf32> to vector<8x1xf32>
    %31 = tpu.reciprocal %30 {approx = true} : vector<8x1xf32> -> vector<8x1xf32>
    %32 = vector.broadcast %31 : vector<8x1xf32> to vector<8x8xf32>
    %33 = arith.mulf %28, %32 : vector<8x8xf32>
    %cst_27 = arith.constant dense<0.000000e+00> : vector<8x8xf32>
    %34 = tpu.matmul %33, %22, %cst_27 {dimension_numbers = #tpu.dot_dimension_numbers<[1], [0], [0], [1], [0, 0, 1, 1], [], []>} : vector<8x8xf32>, vector<8x8xf32>, vector<8x8xf32> -> vector<8x8xf32>
    %35 = vector.extract_strided_slice %15 {offsets = [0, 8], sizes = [8, 8], strides = [1, 1]} : vector<8x32xf32> to vector<8x8xf32>
    %36 = vector.extract_strided_slice %18 {offsets = [0, 8], sizes = [8, 8], strides = [1, 1]} : vector<8x32xf32> to vector<8x8xf32>
    %37 = vector.extract_strided_slice %19 {offsets = [0, 8], sizes = [8, 8], strides = [1, 1]} : vector<8x32xf32> to vector<8x8xf32>
    %cst_28 = arith.constant dense<0.000000e+00> : vector<8x8xf32>
    %38 = tpu.matmul %35, %36, %cst_28 {dimension_numbers = #tpu.dot_dimension_numbers<[1], [1], [0], [0], [0, 0, 1, 0], [], []>} : vector<8x8xf32>, vector<8x8xf32>, vector<8x8xf32> -> vector<8x8xf32>
    %cst_29 = arith.constant dense<0xFF800000> : vector<8xf32>
    %39 = vector.multi_reduction <maximumf>, %38, %cst_29 [1] : vector<8x8xf32> to vector<8xf32>
    %40 = vector.shape_cast %39 : vector<8xf32> to vector<8x1xf32>
    %41 = vector.broadcast %40 : vector<8x1xf32> to vector<8x8xf32>
    %42 = arith.subf %38, %41 : vector<8x8xf32>
    %43 = math.exp %42 : vector<8x8xf32>
    %cst_30 = arith.constant dense<0.000000e+00> : vector<8xf32>
    %44 = vector.multi_reduction <add>, %43, %cst_30 [1] : vector<8x8xf32> to vector<8xf32>
    %45 = vector.shape_cast %44 : vector<8xf32> to vector<8x1xf32>
    %46 = tpu.reciprocal %45 {approx = true} : vector<8x1xf32> -> vector<8x1xf32>
    %47 = vector.broadcast %46 : vector<8x1xf32> to vector<8x8xf32>
    %48 = arith.mulf %43, %47 : vector<8x8xf32>
    %cst_31 = arith.constant dense<0.000000e+00> : vector<8x8xf32>
    %49 = tpu.matmul %48, %37, %cst_31 {dimension_numbers = #tpu.dot_dimension_numbers<[1], [0], [0], [1], [0, 0, 1, 1], [], []>} : vector<8x8xf32>, vector<8x8xf32>, vector<8x8xf32> -> vector<8x8xf32>
    %50 = vector.extract_strided_slice %15 {offsets = [0, 16], sizes = [8, 8], strides = [1, 1]} : vector<8x32xf32> to vector<8x8xf32>
    %51 = vector.extract_strided_slice %18 {offsets = [0, 16], sizes = [8, 8], strides = [1, 1]} : vector<8x32xf32> to vector<8x8xf32>
    %52 = vector.extract_strided_slice %19 {offsets = [0, 16], sizes = [8, 8], strides = [1, 1]} : vector<8x32xf32> to vector<8x8xf32>
    %cst_32 = arith.constant dense<0.000000e+00> : vector<8x8xf32>
    %53 = tpu.matmul %50, %51, %cst_32 {dimension_numbers = #tpu.dot_dimension_numbers<[1], [1], [0], [0], [0, 0, 1, 0], [], []>} : vector<8x8xf32>, vector<8x8xf32>, vector<8x8xf32> -> vector<8x8xf32>
    %cst_33 = arith.constant dense<0xFF800000> : vector<8xf32>
    %54 = vector.multi_reduction <maximumf>, %53, %cst_33 [1] : vector<8x8xf32> to vector<8xf32>
    %55 = vector.shape_cast %54 : vector<8xf32> to vector<8x1xf32>
    %56 = vector.broadcast %55 : vector<8x1xf32> to vector<8x8xf32>
    %57 = arith.subf %53, %56 : vector<8x8xf32>
    %58 = math.exp %57 : vector<8x8xf32>
    %cst_34 = arith.constant dense<0.000000e+00> : vector<8xf32>
    %59 = vector.multi_reduction <add>, %58, %cst_34 [1] : vector<8x8xf32> to vector<8xf32>
    %60 = vector.shape_cast %59 : vector<8xf32> to vector<8x1xf32>
    %61 = tpu.reciprocal %60 {approx = true} : vector<8x1xf32> -> vector<8x1xf32>
    %62 = vector.broadcast %61 : vector<8x1xf32> to vector<8x8xf32>
    %63 = arith.mulf %58, %62 : vector<8x8xf32>
    %cst_35 = arith.constant dense<0.000000e+00> : vector<8x8xf32>
    %64 = tpu.matmul %63, %52, %cst_35 {dimension_numbers = #tpu.dot_dimension_numbers<[1], [0], [0], [1], [0, 0, 1, 1], [], []>} : vector<8x8xf32>, vector<8x8xf32>, vector<8x8xf32> -> vector<8x8xf32>
    %65 = vector.extract_strided_slice %15 {offsets = [0, 24], sizes = [8, 8], strides = [1, 1]} : vector<8x32xf32> to vector<8x8xf32>
    %66 = vector.extract_strided_slice %18 {offsets = [0, 24], sizes = [8, 8], strides = [1, 1]} : vector<8x32xf32> to vector<8x8xf32>
    %67 = vector.extract_strided_slice %19 {offsets = [0, 24], sizes = [8, 8], strides = [1, 1]} : vector<8x32xf32> to vector<8x8xf32>
    %cst_36 = arith.constant dense<0.000000e+00> : vector<8x8xf32>
    %68 = tpu.matmul %65, %66, %cst_36 {dimension_numbers = #tpu.dot_dimension_numbers<[1], [1], [0], [0], [0, 0, 1, 0], [], []>} : vector<8x8xf32>, vector<8x8xf32>, vector<8x8xf32> -> vector<8x8xf32>
    %cst_37 = arith.constant dense<0xFF800000> : vector<8xf32>
    %69 = vector.multi_reduction <maximumf>, %68, %cst_37 [1] : vector<8x8xf32> to vector<8xf32>
    %70 = vector.shape_cast %69 : vector<8xf32> to vector<8x1xf32>
    %71 = vector.broadcast %70 : vector<8x1xf32> to vector<8x8xf32>
    %72 = arith.subf %68, %71 : vector<8x8xf32>
    %73 = math.exp %72 : vector<8x8xf32>
    %cst_38 = arith.constant dense<0.000000e+00> : vector<8xf32>
    %74 = vector.multi_reduction <add>, %73, %cst_38 [1] : vector<8x8xf32> to vector<8xf32>
    %75 = vector.shape_cast %74 : vector<8xf32> to vector<8x1xf32>
    %76 = tpu.reciprocal %75 {approx = true} : vector<8x1xf32> -> vector<8x1xf32>
    %77 = vector.broadcast %76 : vector<8x1xf32> to vector<8x8xf32>
    %78 = arith.mulf %73, %77 : vector<8x8xf32>
    %cst_39 = arith.constant dense<0.000000e+00> : vector<8x8xf32>
    %79 = tpu.matmul %78, %67, %cst_39 {dimension_numbers = #tpu.dot_dimension_numbers<[1], [0], [0], [1], [0, 0, 1, 1], [], []>} : vector<8x8xf32>, vector<8x8xf32>, vector<8x8xf32> -> vector<8x8xf32>
    %80 = tpu.concatenate %34, %49, %64, %79 in 1 : vector<8x8xf32>, vector<8x8xf32>, vector<8x8xf32>, vector<8x8xf32> -> vector<8x32xf32>
    %cst_40 = arith.constant dense<0.000000e+00> : vector<8x32xf32>
    %81 = tpu.matmul %80, %3, %cst_40 {dimension_numbers = #tpu.dot_dimension_numbers<[1], [0], [0], [1], [0, 0, 1, 1], [], []>} : vector<8x32xf32>, vector<32x32xf32>, vector<8x32xf32> -> vector<8x32xf32>
    %82 = vector.broadcast %6 : vector<1x32xf32> to vector<8x32xf32>
    %83 = arith.addf %81, %82 : vector<8x32xf32>
    %c0_41 = arith.constant 0 : index
    %c0_42 = arith.constant 0 : index
    %c0_43 = arith.constant 0 : index
    %84 = vector.load %arg11[%c0_41, %c0_42, %c0_43] : memref<1x8x32xf32, #tpu.memory_space<vmem>>, vector<1x8x32xf32>
    %85 = vector.shape_cast %84 : vector<1x8x32xf32> to vector<8x32xf32>
    %86 = vector.shape_cast %83 : vector<8x32xf32> to vector<1x8x32xf32>
    tpu.vector_store %arg11[%c0_41, %c0_42, %c0_43], %86 {strides = array<i32>} : memref<1x8x32xf32, #tpu.memory_space<vmem>>, vector<1x8x32xf32>,
    return
  }
  func.func @transform_0(%arg0: i32) -> (i32, i32, i32) {
    %c0_i32 = arith.constant 0 : i32
    %c0_i32_0 = arith.constant 0 : i32
    %c0_i32_1 = arith.constant 0 : i32
    return %arg0, %c0_i32, %c0_i32_0 : i32, i32, i32
  }
  func.func @transform_1(%arg0: i32) -> (i32, i32, i32) {
    %c0_i32 = arith.constant 0 : i32
    %c0_i32_0 = arith.constant 0 : i32
    %c0_i32_1 = arith.constant 0 : i32
    return %arg0, %c0_i32, %c0_i32_0 : i32, i32, i32
  }
  func.func @transform_2(%arg0: i32) -> (i32, i32, i32) {
    %c0_i32 = arith.constant 0 : i32
    %c0_i32_0 = arith.constant 0 : i32
    %c0_i32_1 = arith.constant 0 : i32
    return %arg0, %c0_i32, %c0_i32_0 : i32, i32, i32
  }
  func.func @transform_3(%arg0: i32) -> (i32, i32) {
    %c0_i32 = arith.constant 0 : i32
    %c0_i32_0 = arith.constant 0 : i32
    %c0_i32_1 = arith.constant 0 : i32
    return %c0_i32, %c0_i32_0 : i32, i32
  }
  func.func @transform_4(%arg0: i32) -> (i32, i32) {
    %c0_i32 = arith.constant 0 : i32
    %c0_i32_0 = arith.constant 0 : i32
    %c0_i32_1 = arith.constant 0 : i32
    return %c0_i32, %c0_i32_0 : i32, i32
  }
  func.func @transform_5(%arg0: i32) -> (i32, i32) {
    %c0_i32 = arith.constant 0 : i32
    %c0_i32_0 = arith.constant 0 : i32
    %c0_i32_1 = arith.constant 0 : i32
    return %c0_i32, %c0_i32_0 : i32, i32
  }
  func.func @transform_6(%arg0: i32) -> (i32, i32) {
    %c0_i32 = arith.constant 0 : i32
    %c0_i32_0 = arith.constant 0 : i32
    %c0_i32_1 = arith.constant 0 : i32
    return %c0_i32, %c0_i32_0 : i32, i32
  }
  func.func @transform_7(%arg0: i32) -> (i32, i32) {
    %c0_i32 = arith.constant 0 : i32
    %c0_i32_0 = arith.constant 0 : i32
    %c0_i32_1 = arith.constant 0 : i32
    return %c0_i32, %c0_i32_0 : i32, i32
  }
  func.func @transform_8(%arg0: i32) -> (i32, i32) {
    %c0_i32 = arith.constant 0 : i32
    %c0_i32_0 = arith.constant 0 : i32
    %c0_i32_1 = arith.constant 0 : i32
    return %c0_i32, %c0_i32_0 : i32, i32
  }
  func.func @transform_9(%arg0: i32) -> (i32, i32) {
    %c0_i32 = arith.constant 0 : i32
    %c0_i32_0 = arith.constant 0 : i32
    %c0_i32_1 = arith.constant 0 : i32
    return %c0_i32, %c0_i32_0 : i32, i32
  }
  func.func @transform_10(%arg0: i32) -> (i32, i32, i32) {
    %c0_i32 = arith.constant 0 : i32
    %c0_i32_0 = arith.constant 0 : i32
    %c0_i32_1 = arith.constant 0 : i32
    return %arg0, %c0_i32, %c0_i32_0 : i32, i32, i32
  }
}

</mosaic_0001>

<bundles_post_ra>
// kernel: tpu_custom_call.1
= control target key start
LH: loop header
LB: loop body
LE: loop exit
PB: predicated region body
PF: predicated region fallthrough
CT: control target
= control target key end

     0   :  { %s2803_s0 = inlined_call_operand.hbm [shape: f32[2,8,32], index: 0, kind: input, shape index: {}]   ;;  %s2804_s1 = inlined_call_operand.hbm [shape: f32[2,8,32], index: 1, kind: input, shape index: {}]   ;;  %s2805_s2 = inlined_call_operand.hbm [shape: f32[2,8,32], index: 2, kind: input, shape index: {}]   ;;  %s2806_s3 = inlined_call_operand.hbm [shape: f32[32,32], index: 3, kind: input, shape index: {}]   ;;  %s2807_s4 = inlined_call_operand.vmem [shape: f32[1,32], index: 4, kind: input, shape index: {}]   ;;  %s2808_s5 = inlined_call_operand.hbm [shape: f32[32,32], index: 5, kind: input, shape index: {}]   ;;  %s2809_s6 = inlined_call_operand.vmem [shape: f32[1,32], index: 6, kind: input, shape index: {}]   ;;  %s2810_s7 = inlined_call_operand.hbm [shape: f32[32,32], index: 7, kind: input, shape index: {}]   ;;  %s2811_s8 = inlined_call_operand.hbm [shape: f32[32,32], index: 8, kind: input, shape index: {}]   ;;  %s2812_s9 = inlined_call_operand.vmem [shape: f32[1,32], index: 9, kind: input, shape index: {}]   ;;  %s2813_s10 = inlined_call_operand.hbm [shape: f32[2,8,32], index: 10, kind: output, shape index: {}]  }
   0x1   :  { %2839 = sst [smem:[#allocation26_spill]] %s2804_s1 }
   0x2   :  { %2840 = sst [smem:[#allocation27_spill]] %s2806_s3 }
   0x3   :  { %2841 = sst [smem:[#allocation28_spill]] %s2807_s4 }
   0x4   :  { %2842 = sst [smem:[#allocation29_spill]] %s2810_s7 }
   0x5   :  { %2843 = sst [smem:[#allocation30_spill]] %s2812_s9 }
   0x6   :  { %2844 = sst [smem:[#allocation31_spill]] %s2813_s10 }
   0x7   :  { %15 = vsyncpa [#allocation3], 0 }
   0x8   :  { %17 = vsyncpa [#allocation3 + $0x1], 0 }
   0x9   :  { %18 = vsyncpa [#allocation6], 0 }
   0xa   :  { %20 = vsyncpa [#allocation6 + $0x1], 0 }
   0xb   :  { %21 = vsyncpa [#allocation9], 0 }
   0xc   :  { %22 = vsyncpa [#allocation12], 0 }
   0xd   :  { %23 = vsyncpa [#allocation4], 0 }
   0xe   :  { %25 = vsyncpa [#allocation4 + $0x1], 0  ;;  %s2346_s13 = smov 0   ;;  %s2348_s14 = smov 0  }
   0xf   :  { %s2350_s15 = smov 0   ;;  %s2352_s16 = smov 0  }
  0x10 LB: > { %2845 = sst [smem:[#allocation20_spill]] %s2258_s13  ;;  %s2272_s17 = smov [#allocation8]   ;;  %s2270_s16 = sphi %s2352_s16, %s2886_s16   ;;  %s2266_s15 = sphi %s2350_s15, %s2890_s15   ;;  %s2262_s14 = sphi %s2348_s14, %s2889_s14   ;;  %s2258_s13 = sphi %s2346_s13, %s2888_s13  }
  0x11   : > { %2846 = sst [smem:[#allocation21_spill]] %s2270_s16  ;;  %s299_s18 = sshll.u32 %s2272_s17, 4  ;;  %s2372_s18 = int_to_ptr.vmem [resolvable:$true] %s299_s18 }
  0x12   : > { %s2367_s19 = sadd.s32 4294967295, %s2270_s16   ;;  %p1678_p0 = scmp.ge.s32.totalorder %s2270_s16, 1 }
  0x13   : > { %p2826_p1 = scmp.eq.s32.totalorder %s2367_s19, 0  ;;  %p287_p2 = scmp.lt.s32.totalorder %s2270_s16, 3 }
  0x14   : > { %s2273_s21 = smov [#allocation11]   ;;  %s2849_s3 = sld [smem:[#allocation27_spill]] }
  0x15   : > { %p2374_p3 = pnand %p1678_p0, %p287_p2  ;;  %s331_s22 = sshll.u32 %s2273_s21, 4  ;;  %s2387_s22 = int_to_ptr.vmem [resolvable:$true] %s331_s22 }
  0x17   : > { %s2847_s20 = scalar_select %p2374_p3, 1, 0 }
  0x18   : > { %p1890_p5 = pneg %p2374_p3 }
  0x1a   : > { %p2383_p6 = pnand %p1890_p5, %p2826_p1  ;;  %s1990_s26 = scalar_lea.hbm %s2849_s3, 512 }
  0x1b   : > { %p1991_p7 = scmp.ne.s32.totalorder %s2849_s3, %s1990_s26  ;;  %p1997_p11 = scmp.lt.u32.totalorder %s1990_s26, %s2849_s3 }
  0x1c   : > { %s2848_s23 = scalar_select %p2383_p6, 1, 0 }
  0x1d   : > { %p2397_p8 = pneg %p2383_p6 }
  0x1f   : > { %s2850_s29 = scalar_select %p2397_p8, 1, 0 }
  0x20   : > { %p1993_p9 = pnand %p2397_p8, %p1991_p7 }
  0x22   : > { %p1994_p10 = pneg %p1993_p9 }
  0x24   : > { %p1999_p12 = pnand %p1997_p11, %p1994_p10 }
  0x26   : > { %2002 = shalt.err (!%p1999_p12)
}
  0x27   : > { %s2003_s12 = scalar_lea.vmem %s2372_s18, 512  ;;  %p2011_p5 = scmp.lt.s32.totalorder %s2372_s18, %s2372_s18 }
  0x28   : > { %p2004_p13 = scmp.ne.s32.totalorder %s2372_s18, %s2003_s12  ;;  %p2012_p4 = scmp.lt.s32.totalorder %s2003_s12, %s2003_s12 }
  0x2a   : > { %p2006_p0 = pnand %p2004_p13, %p2397_p8  ;;  %p2013_p7 = por %p2012_p4, %p2011_p5 }
  0x2c   : > { %p2007_p2 = pneg %p2006_p0 }
  0x2e   : > { %p2014_p9 = pnand %p2013_p7, %p2007_p2 }
  0x30   : > { %2017 = shalt.err (!%p2014_p9)
}
  0x31   : > { %s2816_s17 = smov 128   ;;  %s2818_s21 = smov 8  }
  0x32   : > { %1893 = dma.hbm_to_vmem [thread:$0]  (!%p2383_p6), %s2849_s3, 512, %s2372_s18, [#allocation9], %s2816_s17, %s2816_s17, %s2818_s21  }
  0x33   : > { %s2851_s7 = sld [smem:[#allocation29_spill]] }
  0x39   : > { %s2018_s28 = scalar_lea.hbm %s2851_s7, 512 }
  0x3a   : > { %p2019_p4 = scmp.ne.s32.totalorder %s2851_s7, %s2018_s28  ;;  %p2025_p12 = scmp.lt.u32.totalorder %s2018_s28, %s2851_s7 }
  0x3c   : > { %p2021_p10 = pnand %p2019_p4, %p2397_p8 }
  0x3e   : > { %p2022_p11 = pneg %p2021_p10 }
  0x40   : > { %p2027_p13 = pnand %p2025_p12, %p2022_p11 }
  0x42   : > { %2030 = shalt.err (!%p2027_p13)
}
  0x43   : > { %s2031_s18 = scalar_lea.vmem %s2387_s22, 512  ;;  %p2039_p7 = scmp.lt.s32.totalorder %s2387_s22, %s2387_s22 }
  0x44   : > { %p2032_p0 = scmp.ne.s32.totalorder %s2387_s22, %s2031_s18  ;;  %p2040_p9 = scmp.lt.s32.totalorder %s2031_s18, %s2031_s18 }
  0x46   : > { %p2034_p2 = pnand %p2032_p0, %p2397_p8  ;;  %p2041_p4 = por %p2040_p9, %p2039_p7 }
  0x48   : > { %p2035_p5 = pneg %p2034_p2 }
  0x4a   : > { %p2042_p10 = pnand %p2041_p4, %p2035_p5 }
  0x4c   : > { %2045 = shalt.err (!%p2042_p10)
}
  0x4d   : > { %1899 = dma.hbm_to_vmem [thread:$0]  (!%p2383_p6), %s2851_s7, 512, %s2387_s22, [#allocation12], %s2816_s17, %s2816_s17, %s2818_s21  }
  0x4e   : > { %s1677_s25 = sadd.s32 4294967294, %s2270_s16   ;;  %s2449_s26 = sadd.s32 1, %s2270_s16  }
  0x4f   : > { %2852 = sst [smem:[#allocation22_spill]] %s2449_s26  ;;  %s35_s27 = ssub.s32 %s2270_s16, %s2449_s26 }
  0x50   : > { %s38_s28 = sadd.s32 1, %s2266_s15  ;;  %p36_p11 = scmp.eq.s32.totalorder %s35_s27, 0 }
  0x51   : > { %p45_p12 = scmp.ne.s32.totalorder %s2266_s15, %s2262_s14  ;;  %p46_p13 = scmp.eq.s32.totalorder %s2270_s16, 0 }
  0x52   : > { %p51_p0 = scmp.ne.s32.totalorder %s2262_s14, %s2258_s13  ;;  %p274_p7 = scmp.eq.s32.totalorder %s2367_s19, 1 }
  0x53   : > { %s2460_s30 = scalar_select %p36_p11, %s2266_s15, %s38_s28  }
  0x54   : > { %p47_p2 = por %p46_p13, %p45_p12  ;;  %p2464_p5 = por %p2826_p1, %p51_p0 }
  0x55   : > { %2853 = sst [smem:[#allocation23_spill]] %s2460_s30  ;;  %p280_p9 = scmp.eq.s32.totalorder %s1677_s25, 1 }
  0x56   : > { %s2854_s11 = scalar_select %p2464_p5, 1, 0 }
  0x57   : > { %p1921_p4 = scmp.lt.s32.totalorder %s2270_s16, 2  ;;  %s2820_s22 = sand.u32 1, %s2266_s15  }
  0x58   : > { %p2471_p10 = por %p274_p7, %p45_p12  ;;  %p2475_p3 = por %p280_p9, %p51_p0 }
  0x59   : > { %s2481_s10 = sshll.u32 %s2820_s22, 3  ;;  %s2484_s24 = sshll.u32 %s2270_s16, 7 }
  0x5a   : > { %s2855_s12 = scalar_select %p2471_p10, 1, 0 }
  0x5b   : > { %s2857_s18 = scalar_select %p2475_p3, 1, 0 }
  0x5c   : > { %2856 = sst [smem:[#allocation24_spill]] %s2855_s12  ;;  %p2486_p11 = pnand %p1921_p4, %p47_p2 }
  0x5d   : > { %2858 = sst [smem:[#allocation25_spill]] %s2857_s18  ;;  %s379_s25 = sand.u32 1, %s2270_s16  }
  0x5e   : > { %s2859_s27 = scalar_select %p2486_p11, 1, 0 }
  0x5f   : > { %s2860_s1 = sld [smem:[#allocation26_spill]]  ;;  %s383_s22 = scalar_lea.vmem [#allocation5], %s2481_s10 }
  0x60   : > { %s390_s3 = sshll.u32 %s383_s22, 4  ;;  %s2276_s7 = smov [#allocation10]   ;;  %s2498_s3 = int_to_ptr.vmem [resolvable:$true] %s390_s3 }
  0x61   : > { %s2500_s30 = sshll.u32 %s2276_s7, 4  ;;  %s2502_s26 = scalar_lea.sflag [#allocation6], %s379_s25  ;;  %s316_s30 = int_to_ptr.vmem [resolvable:$true] %s2500_s30 }
  0x62   : > { %p2508_p13 = pneg %p2486_p11 }
  0x64   : > { %s2861_s17 = scalar_select %p2508_p13, 1, 0 }
  0x65   : > { %s2495_s21 = scalar_lea.hbm %s2860_s1, %s2484_s24  ;;  %s2051_s16 = scalar_lea.hbm %s2860_s1, 256 }
  0x66   : > { %s2046_s18 = scalar_lea.hbm %s2495_s21, 128  ;;  %p2052_p7 = scmp.lt.u32.totalorder %s2495_s21, %s2860_s1 }
  0x67   : > { %p2047_p12 = scmp.ne.s32.totalorder %s2495_s21, %s2046_s18  ;;  %p2053_p9 = scmp.lt.u32.totalorder %s2051_s16, %s2046_s18 }
  0x68   : > { %p2055_p1 = scmp.lt.u32.totalorder %s2046_s18, %s2495_s21 }
  0x69   : > { %p2049_p0 = pnand %p2508_p13, %p2047_p12  ;;  %p2054_p4 = por %p2053_p9, %p2052_p7 }
  0x6b   : > { %p2050_p2 = pneg %p2049_p0  ;;  %p2056_p3 = por %p2055_p1, %p2054_p4 }
  0x6d   : > { %p2057_p10 = pnand %p2056_p3, %p2050_p2 }
  0x6f   : > { %2060 = shalt.err (!%p2057_p10)
}
  0x70   : > { %s2061_s25 = scalar_lea.vmem %s2498_s3, 128  ;;  %s2277_s28 = smov [#allocation5]  }
  0x71   : > { %p2062_p12 = scmp.ne.s32.totalorder %s2498_s3, %s2061_s25  ;;  %s2066_s22 = sshll.u32 %s2277_s28, 4  ;;  %s2067_s22 = int_to_ptr.vmem [resolvable:$false] %s2066_s22 }
  0x72   : > { %s2068_s13 = scalar_lea.vmem %s2067_s22, 256  ;;  %p2069_p6 = scmp.lt.s32.totalorder %s2498_s3, %s2067_s22 }
  0x73   : > { %p2064_p0 = pnand %p2062_p12, %p2508_p13  ;;  %p2070_p8 = scmp.lt.s32.totalorder %s2068_s13, %s2061_s25 }
  0x75   : > { %p2065_p5 = pneg %p2064_p0  ;;  %p2071_p7 = por %p2070_p8, %p2069_p6 }
  0x77   : > { %p2072_p9 = pnand %p2071_p7, %p2065_p5 }
  0x79   : > { %2075 = shalt.err (!%p2072_p9)
}
  0x7a   : > { %1909 = dma.hbm_to_vmem [thread:$0]  (!%p2486_p11), %s2495_s21, 128, %s2498_s3, %s2502_s26  }
  0x7b   : > { %s2076_s7 = scalar_lea.hbm %s2808_s5, 512  ;;  %p2862_p3 = scmp.ne.s32.totalorder %s2850_s29, 0 }
  0x7c   : > { %p2077_p1 = scmp.ne.s32.totalorder %s2808_s5, %s2076_s7  ;;  %p2083_p5 = scmp.lt.u32.totalorder %s2076_s7, %s2808_s5 }
  0x7e   : > { %p2079_p6 = pnand %p2077_p1, %p2862_p3 }
  0x80   : > { %p2080_p8 = pneg %p2079_p6 }
  0x82   : > { %p2085_p10 = pnand %p2083_p5, %p2080_p8 }
  0x84   : > { %2088 = shalt.err (!%p2085_p10)
}
  0x85   : > { %s2089_s13 = scalar_lea.vmem %s316_s30, 512  ;;  %p2097_p0 = scmp.lt.s32.totalorder %s316_s30, %s316_s30 }
  0x86   : > { %p2090_p2 = scmp.ne.s32.totalorder %s316_s30, %s2089_s13  ;;  %p2098_p7 = scmp.lt.s32.totalorder %s2089_s13, %s2089_s13 }
  0x88   : > { %p2092_p4 = pnand %p2090_p2, %p2862_p3  ;;  %p2099_p9 = por %p2098_p7, %p2097_p0 }
  0x8a   : > { %p2093_p12 = pneg %p2092_p4 }
  0x8c   : > { %p2100_p11 = pnand %p2099_p9, %p2093_p12 }
  0x8e   : > { %2103 = shalt.err (!%p2100_p11)
}
  0x8f   : > { %p2863_p1 = scmp.ne.s32.totalorder %s2848_s23, 0  ;;  %s2864_s1 = smov 8  }
  0x90   : > { %s2865_s3 = smov 128   ;;  %s2278_s18 = smov [#allocation13]  }
  0x91   : > { %1896 = dma.hbm_to_vmem [thread:$0]  (!%p2863_p1), %s2808_s5, 512, %s316_s30, [#allocation9], %s2865_s3, %s2865_s3, %s2864_s1  }
  0x92   : > { %s344_s7 = sshll.u32 %s2278_s18, 4  ;;  %s2104_s22 = scalar_lea.hbm %s2811_s8, 512  ;;  %s345_s7 = int_to_ptr.vmem [resolvable:$true] %s344_s7 }
  0x93   : > { %p2105_p11 = scmp.ne.s32.totalorder %s2811_s8, %s2104_s22  ;;  %p2111_p5 = scmp.lt.u32.totalorder %s2104_s22, %s2811_s8 }
  0x95   : > { %p2107_p6 = pnand %p2105_p11, %p2862_p3 }
  0x97   : > { %p2108_p8 = pneg %p2107_p6 }
  0x99   : > { %p2113_p10 = pnand %p2111_p5, %p2108_p8 }
  0x9b   : > { %2116 = shalt.err (!%p2113_p10)
}
  0x9c   : > { %s2117_s30 = scalar_lea.vmem %s345_s7, 512  ;;  %p2125_p0 = scmp.lt.s32.totalorder %s345_s7, %s345_s7 }
  0x9d   : > { %p2118_p2 = scmp.ne.s32.totalorder %s345_s7, %s2117_s30  ;;  %p2126_p7 = scmp.lt.s32.totalorder %s2117_s30, %s2117_s30 }
  0x9f   : > { %p2120_p4 = pnand %p2118_p2, %p2862_p3  ;;  %p2127_p9 = por %p2126_p7, %p2125_p0 }
  0xa1   : > { %p2121_p12 = pneg %p2120_p4 }
  0xa3   : > { %p2128_p13 = pnand %p2127_p9, %p2121_p12 }
  0xa5   : > { %2131 = shalt.err (!%p2128_p13)
}
  0xa6   : > { %1902 = dma.hbm_to_vmem [thread:$0]  (!%p2863_p1), %s2811_s8, 512, %s345_s7, [#allocation12], %s2865_s3, %s2865_s3, %s2864_s1  }
  0xa7   : > { %s2579_s21 = scalar_lea.hbm %s2803_s0, %s2484_s24  ;;  %s365_s23 = scalar_lea.vmem [#allocation2], %s2481_s10 }
  0xa8   : > { %s372_s16 = sshll.u32 %s365_s23, 4  ;;  %s2866_s18 = sand.u32 1, %s2266_s15   ;;  %s373_s16 = int_to_ptr.vmem [resolvable:$true] %s372_s16 }
  0xa9   : > { %s362_s28 = scalar_lea.sflag [#allocation3], %s2866_s18  ;;  %s2132_s25 = scalar_lea.hbm %s2579_s21, 128 }
  0xaa   : > { %p2133_p13 = scmp.ne.s32.totalorder %s2579_s21, %s2132_s25  ;;  %p2867_p3 = scmp.ne.s32.totalorder %s2861_s17, 0 }
  0xab   : > { %s2137_s7 = scalar_lea.hbm %s2803_s0, 256  ;;  %p2138_p1 = scmp.lt.u32.totalorder %s2579_s21, %s2803_s0 }
  0xac   : > { %p2135_p11 = pnand %p2133_p13, %p2867_p3  ;;  %p2139_p8 = scmp.lt.u32.totalorder %s2137_s7, %s2132_s25 }
  0xad   : > { %p2141_p10 = scmp.lt.u32.totalorder %s2132_s25, %s2579_s21 }
  0xae   : > { %p2136_p6 = pneg %p2135_p11  ;;  %p2140_p5 = por %p2139_p8, %p2138_p1 }
  0xb0   : > { %p2142_p2 = por %p2141_p10, %p2140_p5 }
  0xb2   : > { %p2143_p4 = pnand %p2142_p2, %p2136_p6 }
  0xb4   : > { %2146 = shalt.err (!%p2143_p4)
}
  0xb5   : > { %s2147_s30 = scalar_lea.vmem %s373_s16, 128  ;;  %s2279_s4 = smov [#allocation2]  }
  0xb6   : > { %p2148_p12 = scmp.ne.s32.totalorder %s373_s16, %s2147_s30  ;;  %s2152_s9 = sshll.u32 %s2279_s4, 4  ;;  %s2153_s9 = int_to_ptr.vmem [resolvable:$false] %s2152_s9 }
  0xb7   : > { %s2154_s29 = scalar_lea.vmem %s2153_s9, 256  ;;  %p2155_p9 = scmp.lt.s32.totalorder %s373_s16, %s2153_s9 }
  0xb8   : > { %p2150_p0 = pnand %p2148_p12, %p2867_p3  ;;  %p2156_p13 = scmp.lt.s32.totalorder %s2154_s29, %s2147_s30 }
  0xba   : > { %p2151_p7 = pneg %p2150_p0  ;;  %p2157_p11 = por %p2156_p13, %p2155_p9 }
  0xbc   : > { %p2158_p1 = pnand %p2157_p11, %p2151_p7 }
  0xbe   : > { %2161 = shalt.err (!%p2158_p1)
}
  0xbf   : > { %p2868_p8 = scmp.ne.s32.totalorder %s2859_s27, 0  ;;  %s2605_s18 = scalar_lea.hbm %s2805_s2, %s2484_s24 }
  0xc0   : > { %s401_s25 = scalar_lea.vmem [#allocation7], %s2481_s10  ;;  %s2162_s3 = scalar_lea.hbm %s2605_s18, 128 }
  0xc1   : > { %1906 = dma.hbm_to_vmem [thread:$0]  (!%p2868_p8), %s2579_s21, 128, %s373_s16, %s362_s28  }
  0xc2   : > { %s408_s1 = sshll.u32 %s401_s25, 4  ;;  %p2163_p6 = scmp.ne.s32.totalorder %s2605_s18, %s2162_s3  ;;  %s409_s1 = int_to_ptr.vmem [resolvable:$true] %s408_s1 }
  0xc3   : > { %s2167_s21 = scalar_lea.hbm %s2805_s2, 256  ;;  %p2168_p2 = scmp.lt.u32.totalorder %s2605_s18, %s2805_s2 }
  0xc4   : > { %p2165_p5 = pnand %p2163_p6, %p2867_p3  ;;  %p2169_p4 = scmp.lt.u32.totalorder %s2167_s21, %s2162_s3 }
  0xc5   : > { %p2171_p0 = scmp.lt.u32.totalorder %s2162_s3, %s2605_s18 }
  0xc6   : > { %p2166_p10 = pneg %p2165_p5  ;;  %p2170_p12 = por %p2169_p4, %p2168_p2 }
  0xc8   : > { %p2172_p7 = por %p2171_p0, %p2170_p12 }
  0xca   : > { %p2173_p9 = pnand %p2172_p7, %p2166_p10 }
  0xcc   : > { %2176 = shalt.err (!%p2173_p9)
}
  0xcd   : > { %s2177_s10 = scalar_lea.vmem %s409_s1, 128  ;;  %s2280_s24 = smov [#allocation7]  }
  0xce   : > { %p2178_p13 = scmp.ne.s32.totalorder %s409_s1, %s2177_s10  ;;  %s2182_s13 = sshll.u32 %s2280_s24, 4  ;;  %s2183_s13 = int_to_ptr.vmem [resolvable:$false] %s2182_s13 }
  0xcf   : > { %s2184_s30 = scalar_lea.vmem %s2183_s13, 256  ;;  %p2185_p6 = scmp.lt.s32.totalorder %s409_s1, %s2183_s13 }
  0xd0   : > { %p2180_p11 = pnand %p2178_p13, %p2867_p3  ;;  %p2186_p5 = scmp.lt.s32.totalorder %s2184_s30, %s2177_s10 }
  0xd2   : > { %p2181_p1 = pneg %p2180_p11  ;;  %p2187_p8 = por %p2186_p5, %p2185_p6 }
  0xd4   : > { %p2188_p2 = pnand %p2187_p8, %p2181_p1 }
  0xd6   : > { %2191 = shalt.err (!%p2188_p2)
}
  0xd7   : > { %p2869_p4 = scmp.ne.s32.totalorder %s2859_s27, 0  ;;  %p2870_p10 = scmp.ne.s32.totalorder %s2847_s20, 0 }
  0xd8   : > { %s2629_s17 = sand.u32 (!%p2870_p10), 1, %s2262_s14   ;;  %p2871_p3 = scmp.ne.s32.totalorder (!%p2870_p10), %s2854_s11, 0 }
  0xd9   : > { %1912 = dma.hbm_to_vmem [thread:$0]  (!%p2869_p4), %s2605_s18, 128, %s409_s1, %s2502_s26  }
  0xda   : > { %417 = sbr.rel (%p2870_p10) target bundleno = 2139 (0x85b), region = 60  ;;  %s2632_s4 = sshll.u32 (!%p2870_p10), %s2629_s17, 3 }
  0xdb   : > { %s420_s9 = scalar_lea.sflag (!%p2870_p10), [#allocation3], %s2629_s17  ;;  %s423_s29 = scalar_lea.vmem (!%p2870_p10), [#allocation2], %s2632_s4 }
  0xe1   : > { %2237 = dma.done.wait (%p2871_p3), %s420_s9, 128  }
  0xe2   : > { %2239 = vsyncadd (%p2871_p3), %s420_s9, 4294967168  ;;  %s428_s20 = sand.u32 1, %s2367_s19   ;;  %s432_s27 = scalar_lea.vmem [#allocation5], %s2632_s4 }
  0xe3   : > { %s429_s26 = scalar_lea.sflag [#allocation6], %s428_s20 }
  0xe4   : > { %2241 = dma.done.wait (%p2871_p3), %s429_s26, 256  }
  0xe5   : > { %2243 = vsyncadd (%p2871_p3), %s429_s26, 4294967040  ;;  %s441_s12 = scalar_lea.vmem [#allocation7], %s2632_s4  ;;  %p2872_p8 = scmp.eq.s32.totalorder %s2367_s19, 0 }
  0xe7   : > { %2245 = dma.done.wait (%p2872_p8), [#allocation9], 1024   ;;  %p2873_p12 = pmov %p2872_p8 }
  0xe8   : > { %p2874_p0 = pmov %p2872_p8 }
  0xe9   : > { %2247 = vsyncadd (%p2873_p12), [#allocation9], 4294966272 }
  0xea   : > { %2249 = dma.done.wait (%p2874_p0), [#allocation12], 1024   ;;  %p2875_p7 = pmov %p2874_p0 }
  0xeb   : > { %v2281_v0 = vmov 0.0|0.0   ;;  %vm2282_vm0 = vmmov 0   ;;  %v2283_v1 = vmov 0.0   ;;  %v508_v2 = vld [vmem:[#allocation10] sm:$0xff]  ;;  %v509_v3 = vld [vmem:[#allocation10 + $0x8] sm:$0xff]  ;;  %v510_v7 = vld [vmem:[#allocation10 + $0x10] sm:$0xff] }
  0xec   : > { %2251 = vsyncadd (%p2875_p7), [#allocation12], 4294966272  ;;  %1848 = vmatprep.subr.bf16.mxu1 %v2281_v0  ;;  %1842 = vmatprep.subr.bf16.mxu0 %v2281_v0  ;;  %v504_v4 = vld [vmem:[#allocation8] sm:$0xff]  ;;  %v1849_v5 = vpack.c.bf16 %v509_v3, %v508_v2  ;;  %v505_v6 = vld [vmem:[#allocation8 + $0x8] sm:$0xff]  ;;  %vm532_vm1 = vcmask 261120   ;;  %s2876_s1 = sld [smem:[#allocation28_spill]] }
  0xed   : > { %1777 = vmatprep.mubr.msk.f32.mxu1 %vm2282_vm0, %v2283_v1  ;;  %1766 = vmatprep.mubr.msk.f32.mxu0 %vm2282_vm0, %v2283_v1  ;;  %v511_v8 = vld [vmem:[#allocation10 + $0x18] sm:$0xff]  ;;  %v1843_v9 = vpack.c.bf16 %v505_v6, %v504_v4  ;;  %v506_v10 = vld [vmem:[#allocation8 + $0x10] sm:$0xff]  ;;  %v524_v14 = vld [vmem:[%s432_s27] sm:$0xff]  ;;  %vm758_vm2 = vcmask 64512   ;;  %s2284_s3 = smov 120   ;;  %s2285_s7 = smov 112  }
  0xee   : > { %v507_v11 = vld [vmem:[#allocation8 + $0x18] sm:$0xff]  ;;  %1850 = vmatpush3.bf16.msra.mxu1 %v1849_v5  ;;  %v1852_v12 = vpack.c.bf16 %v511_v8, %v510_v7  ;;  %v1701_v16 = vld [vmem:[%s2809_s6] ss:$0 sm:$0xff]  ;;  %s2286_s22 = smov 104   ;;  %v512_v24 = vld [vmem:[#allocation11] sm:$0xff]  ;;  %s2287_s21 = smov 8  }
  0xef   : > { %1844 = vmatpush3.bf16.msra.mxu0 %v1843_v9  ;;  %1851 = vmatprep.subr.bf16.mxu1 %v2281_v0  ;;  %v1846_v13 = vpack.c.bf16 %v507_v11, %v506_v10  ;;  %v523_v15 = vld [vmem:[%s423_s29] sm:$0xff]  ;;  %v513_v25 = vld [vmem:[#allocation11 + $0x8] sm:$0xff]  ;;  %s2288_s16 = smov 16   ;;  %s2289_s28 = smov 24   ;;  %vm1428_vm3 = vcmask 130048   ;;  %vm1430_vm4 = vcmask 195584  }
  0xf0   : > { %1845 = vmatprep.subr.bf16.mxu0 %v2281_v0  ;;  %v514_v26 = vld [vmem:[#allocation11 + $0x10] sm:$0xff]  ;;  %v1855_v27 = vpack.c.bf16 %v513_v25, %v512_v24  ;;  %v515_v28 = vld [vmem:[#allocation11 + $0x18] sm:$0xff]  ;;  %s2877_s10 = sld [smem:[#allocation24_spill]]  ;;  %s2878_s30 = sld [smem:[#allocation30_spill]] }
  0xf1   : > { %v1858_v29 = vpack.c.bf16 %v515_v28, %v514_v26  ;;  %v525_v30 = vld [vmem:[%s441_s12] sm:$0xff]  ;;  %v516_v26 = vld [vmem:[#allocation13] sm:$0xff]  ;;  %s1719_s9 = sshll.u32 %s2367_s19, 7  ;;  %s503_s29 = scalar_lea.vmem [#allocation14], %s2632_s4 }
  0xf2   : > { %1853 = vmatpush3.bf16.msra.mxu1 %v1852_v12  ;;  %v1699_v17 = vld [vmem:[%s2876_s1] ss:$0 sm:$0xff]  ;;  %s1526_s20 = sshll.u32 %s503_s29, 4  ;;  %s2879_s12 = sld [smem:[#allocation31_spill]]  ;;  %s2760_s20 = int_to_ptr.vmem [resolvable:$true] %s1526_s20 }
  0xf3   : > { %1847 = vmatpush3.bf16.msra.mxu0 %v1846_v13  ;;  %1791 = vmatprep.subr.mxu1 %v2283_v1  ;;  %s1513_s23 = scalar_lea.sflag [#allocation4], %s2629_s17  ;;  %s2192_s18 = scalar_lea.vmem %s2760_s20, 128 }
  0xf4   : > { %1854 = vmatprep.subr.bf16.mxu0 %v2281_v0  ;;  %p2193_p9 = scmp.ne.s32.totalorder %s2760_s20, %s2192_s18  ;;  %s2290_s19 = smov [#allocation14]  }
  0xf5   : > { %1778 = vmatmul.mubr.msk.f32.vlgmr.msra.gmra.mrb[0].mxu1 %vm532_vm1, %v524_v14  ;;  %s2196_s4 = sshll.u32 %s2290_s19, 4  ;;  %s2197_s4 = int_to_ptr.vmem [resolvable:$false] %s2196_s4 }
  0xf6   : > { %1767 = vmatmul.mubr.msk.f32.vlgmr.msra.gmra.mrb[0].mxu0 %vm532_vm1, %v523_v15  ;;  %1793 = vmatprep.mubr.msk.f32.mxu1 %vm2282_vm0, %v2283_v1  ;;  %p2880_p13 = scmp.ne.s32.totalorder %s2877_s10, 0  ;;  %s2198_s25 = scalar_lea.vmem %s2197_s4, 256 }
  0xf7   : > { %1788 = vmatprep.mubr.msk.f32.mxu0 %vm2282_vm0, %v2283_v1  ;;  %1856 = vmatpush3.bf16.msra.mxu0 %v1855_v27  ;;  %v517_v27 = vld [vmem:[#allocation13 + $0x8] sm:$0xff]  ;;  %p2199_p6 = scmp.lt.s32.totalorder %s2760_s20, %s2197_s4  ;;  %p2200_p5 = scmp.lt.s32.totalorder %s2198_s25, %s2192_s18 }
  0xf8   : > { %1857 = vmatprep.subr.bf16.mxu0 %v2281_v0  ;;  %v1861_v28 = vpack.c.bf16 %v517_v27, %v516_v26  ;;  %s2758_s11 = scalar_lea.hbm %s2879_s12, %s1719_s9  ;;  %p2194_p11 = pnand %p2193_p9, %p2880_p13 }
  0xf9   : > { %p2201_p2 = por %p2200_p5, %p2199_p6 }
  0xfa   : > { %p2195_p1 = pneg %p2194_p11 }
  0xfb   : > { %1859 = vmatpush3.bf16.msra.mxu0 %v1858_v29  ;;  %v518_v29 = vld [vmem:[#allocation13 + $0x10] sm:$0xff] }
  0xfc   : > { %1811 = vmatprep.subr.mxu0 %v2283_v1  ;;  %p2202_p4 = pnand %p2201_p2, %p2195_p1 }
  0xfe   : > { %1789 = vmatmul.mubr.msk.f32.vlgmr.msra.gmra.mrb[2].mxu0 %vm532_vm1, %v525_v30  ;;  %v519_v30 = vld [vmem:[#allocation13 + $0x18] sm:$0xff] }
  0xff   : > { %1813 = vmatprep.mubr.msk.f32.mxu0 %vm2282_vm0, %v2283_v1 }
 0x1c8   : > { %v681_v18 = vpop.f32.mrb[0].mxu1 }
 0x1c9   : > { %v682_v19 = vadd.f32 %v1701_v16, %v681_v18  ;;  %v1779_v20 = vpop.f32.mrb[1].mxu1  ;;  %v602_v21 = vpop.f32.mrb[0].mxu0 }
 0x1ca   : > { %v603_v22 = vadd.f32 %v1699_v17, %v602_v21  ;;  %v1768_v23 = vpop.f32.mrb[1].mxu0 }
 0x1cb   : > { %921 = vrot.lane.b32.xlu1 %v682_v19, %s2284_s3  ;;  %1792 = vmatpush3.xpose.msk.msra.mxu1 %vm758_vm2, %v682_v19 }
 0x1cc   : > { %1796 = vmatprep.subr.mxu1 %v2283_v1 }
 0x1ce   : > { %1794 = vmatmul.mubr.msk.f32.vlgmr.msra.gmra.mrb[2].mxu1 %vm758_vm2, %v603_v22 }
 0x1cf   : > { %919 = vrot.lane.b32.xlu1 %v603_v22, %s2284_s3  ;;  %1798 = vmatprep.mubr.msk.f32.mxu1 %vm2282_vm0, %v2283_v1 }
 0x1d1   : > { %v2700_v39 = vpop.f32.mrb[2].mxu0 }
 0x1d2   : > { %v1790_v40 = vpop.f32.mrb[3].mxu0  ;;  %1797 = vmatpush3.msra.mxu1 %v2700_v39 }
 0x1d3   : > { %1085 = vrot.lane.b32.xlu1 %v603_v22, %s2285_s7  ;;  %1801 = vmatprep.subr.mxu1 %v2283_v1 }
 0x1d7   : > { %1252 = vrot.lane.b32.xlu1 %v682_v19, %s2286_s22 }
 0x1db   : > { %1250 = vrot.lane.b32.xlu1 %v603_v22, %s2286_s22 }
 0x23d   : > { %v922_v41 = vpop.permute.xlu1 %921 }
 0x241   : > { %v920_v42 = vpop.permute.xlu1 %919 }
 0x245   : > { %v1086_v43 = vpop.permute.xlu1 %1085 }
 0x249   : > { %v1253_v46 = vpop.permute.xlu1 %1252 }
 0x24d   : > { %v1251_v48 = vpop.permute.xlu1 %1250 }
 0x2a1   : > { %v831_v31 = vpop.f32.mrb[2].mxu1 }
 0x2a2   : > { %v1795_v32 = vpop.f32.mrb[3].mxu1  ;;  %v835_v33 = vsel %vm758_vm2, %v831_v31, -inf }
 0x2a3   : > { %836 = vmax.xlane.f32.xlu0 %v835_v33 }
 0x330   : > { %v837_v34 = vpop.xlane.xlu0 %836 }
 0x331   : > { %v838_v35 = vsub.f32 %v831_v31, %v837_v34  ;;  %v1864_v31 = vpack.c.bf16 %v519_v30, %v518_v29 }
 0x333   : > { %v839_v36 = vmul.f32 1.442695, %v838_v35 }
 0x335   : > { %1974 = vpow2.f32 %v839_v36 }
 0x33f   : > { %v1975_v37 = vpop.eup %1974 }
 0x340   : > { %v841_v38 = vsel %vm758_vm2, %v1975_v37, 0.0 }
 0x341   : > { %842 = vadd.xlane.f32.xlu0 %v841_v38 }
 0x357   : > { %1087 = vrot.lane.b32.xlu0 %v682_v19, %s2285_s7 }
 0x3ce   : > { %v843_v44 = vpop.xlane.xlu0 %842 }
 0x3cf   : > { %1976 = vrcp.f32 %v843_v44 }
 0x3d2   : > { %v1088_v45 = vpop.permute.xlu0 %1087 }
 0x3d3   : > { %1812 = vmatpush3.xpose.msk.msra.mxu0 %vm758_vm2, %v1088_v45 }
 0x3d4   : > { %1821 = vmatprep.subr.mxu0 %v2283_v1 }
 0x3d6   : > { %1814 = vmatmul.mubr.msk.f32.vlgmr.msra.gmra.mrb[4].mxu0 %vm758_vm2, %v1086_v43 }
 0x3d7   : > { %1822 = vmatpush3.xpose.msk.msra.mxu0 %vm758_vm2, %v1253_v46  ;;  %1823 = vmatprep.mubr.msk.f32.mxu0 %vm2282_vm0, %v2283_v1 }
 0x3d8   : > { %1860 = vmatprep.subr.bf16.mxu0 %v2281_v0 }
 0x3d9   : > { %v1977_v47 = vpop.eup %1976 }
 0x3da   : > { %v845_v49 = vmul.f32 %v1977_v47, %v1975_v37  ;;  %1824 = vmatmul.mubr.msk.f32.vlgmr.msra.gmra.mrb[6].mxu0 %vm758_vm2, %v1251_v48 }
 0x3db   : > { %1839 = vmatprep.mubr.msk.f32.mxu0 %vm2282_vm0, %v2283_v1  ;;  %1862 = vmatpush3.bf16.msra.mxu0 %v1861_v28 }
 0x3dc   : > { %1799 = vmatmul.mubr.msk.f32.vlgmr.msra.gmra.mrb[4].mxu1 %vm758_vm2, %v845_v49  ;;  %1863 = vmatprep.subr.bf16.mxu0 %v2281_v0 }
 0x3dd   : > { %1802 = vmatpush3.xpose.msk.msra.mxu1 %vm758_vm2, %v922_v41  ;;  %1803 = vmatprep.mubr.msk.f32.mxu1 %vm2282_vm0, %v2283_v1 }
 0x3de   : > { %1806 = vmatprep.subr.mxu1 %v2283_v1 }
 0x3df   : > { %1865 = vmatpush3.bf16.msra.mxu0 %v1864_v31 }
 0x3e0   : > { %1804 = vmatmul.mubr.msk.f32.vlgmr.msra.gmra.mrb[6].mxu1 %vm758_vm2, %v920_v42  ;;  %v1716_v42 = vld [vmem:[%s2878_s30] ss:$0 sm:$0xff] }
 0x3e1   : > { %1808 = vmatprep.mubr.msk.f32.mxu1 %vm2282_vm0, %v2283_v1 }
 0x4a9   : > { %v1159_v50 = vpop.f32.mrb[4].mxu0 }
 0x4aa   : > { %v1815_v51 = vpop.f32.mrb[5].mxu0  ;;  %v1163_v52 = vsel %vm758_vm2, %v1159_v50, -inf }
 0x4ab   : > { %1164 = vmax.xlane.f32.xlu0 %v1163_v52 }
 0x4ad   : > { %v1324_v53 = vpop.f32.mrb[6].mxu0 }
 0x4ae   : > { %v1825_v54 = vpop.f32.mrb[7].mxu0  ;;  %v1328_v60 = vsel %vm758_vm2, %v1324_v53, -inf }
 0x4af   : > { %v2724_v55 = vpop.f32.mrb[4].mxu1 }
 0x4b0   : > { %v1800_v56 = vpop.f32.mrb[5].mxu1 }
 0x4b3   : > { %v993_v57 = vpop.f32.mrb[6].mxu1 }
 0x4b4   : > { %v1805_v58 = vpop.f32.mrb[7].mxu1  ;;  %v997_v59 = vsel %vm758_vm2, %v993_v57, -inf }
 0x4b5   : > { %998 = vmax.xlane.f32.xlu1 %v997_v59 }
 0x4b9   : > { %1329 = vmax.xlane.f32.xlu1 %v1328_v60 }
 0x538   : > { %v1165_v61 = vpop.xlane.xlu0 %1164 }
 0x539   : > { %v1166_v62 = vsub.f32 %v1159_v50, %v1165_v61 }
 0x53b   : > { %v1167_v63 = vmul.f32 1.442695, %v1166_v62 }
 0x53d   : > { %1978 = vpow2.f32 %v1167_v63 }
 0x542   : > { %v999_v2 = vpop.xlane.xlu1 %998 }
 0x543   : > { %v1000_v10 = vsub.f32 %v993_v57, %v999_v2 }
 0x545   : > { %v1001_v11 = vmul.f32 1.442695, %v1000_v10 }
 0x546   : > { %v1330_v3 = vpop.xlane.xlu1 %1329 }
 0x547   : > { %v1979_v4 = vpop.eup %1978  ;;  %v1331_v5 = vsub.f32 %v1324_v53, %v1330_v3 }
 0x548   : > { %v1169_v6 = vsel %vm758_vm2, %v1979_v4, 0.0 }
 0x549   : > { %v1332_v7 = vmul.f32 1.442695, %v1331_v5  ;;  %1170 = vadd.xlane.f32.xlu0 %v1169_v6 }
 0x54b   : > { %1980 = vpow2.f32 %v1332_v7 }
 0x54c   : > { %1982 = vpow2.f32 %v1001_v11 }
 0x555   : > { %v1981_v8 = vpop.eup %1980 }
 0x556   : > { %v1334_v9 = vsel %vm758_vm2, %v1981_v8, 0.0  ;;  %v1983_v12 = vpop.eup %1982 }
 0x557   : > { %1335 = vadd.xlane.f32.xlu1 %v1334_v9  ;;  %v1003_v13 = vsel %vm758_vm2, %v1983_v12, 0.0 }
 0x55f   : > { %1009 = vrot.lane.b32.xlu0 %v2700_v39, %s2284_s3 }
 0x568   : > { %1174 = vrot.lane.b32.xlu1 %v2700_v39, %s2285_s7 }
 0x58c   : > { %1004 = vadd.xlane.f32.xlu1 %v1003_v13 }
 0x59d   : > { %1339 = vrot.lane.b32.xlu1 %v2700_v39, %s2286_s22 }
 0x5d6   : > { %v1171_v14 = vpop.xlane.xlu0 %1170 }
 0x5da   : > { %v1010_v15 = vpop.permute.xlu0 %1009 }
 0x5db   : > { %1807 = vmatpush3.msra.mxu1 %v1010_v15 }
 0x5dc   : > { %1816 = vmatprep.subr.mxu1 %v2283_v1 }
 0x5e4   : > { %v1336_v16 = vpop.xlane.xlu1 %1335 }
 0x5e8   : > { %v1175_v17 = vpop.permute.xlu1 %1174 }
 0x619   : > { %v1005_v18 = vpop.xlane.xlu1 %1004 }
 0x61a   : > { %1984 = vrcp.f32 %v1005_v18 }
 0x61b   : > { %1986 = vrcp.f32 %v1171_v14 }
 0x61c   : > { %1988 = vrcp.f32 %v1336_v16 }
 0x61d   : > { %v1340_v24 = vpop.permute.xlu1 %1339 }
 0x624   : > { %v1985_v19 = vpop.eup %1984 }
 0x625   : > { %v1007_v20 = vmul.f32 %v1985_v19, %v1983_v12  ;;  %v1987_v21 = vpop.eup %1986 }
 0x626   : > { %v1173_v22 = vmul.f32 %v1987_v21, %v1979_v4  ;;  %v1989_v23 = vpop.eup %1988 }
 0x627   : > { %1809 = vmatmul.mubr.msk.f32.vlgmr.msra.gmra.mrb[8].mxu1 %vm758_vm2, %v1007_v20  ;;  %v1338_v25 = vmul.f32 %v1989_v23, %v1981_v8 }
 0x628   : > { %1817 = vmatpush3.msra.mxu1 %v1175_v17  ;;  %1818 = vmatprep.mubr.msk.f32.mxu1 %vm2282_vm0, %v2283_v1 }
 0x629   : > { %1826 = vmatprep.subr.mxu1 %v2283_v1 }
 0x62b   : > { %1819 = vmatmul.mubr.msk.f32.vlgmr.msra.gmra.mrb[10].mxu1 %vm758_vm2, %v1173_v22 }
 0x62c   : > { %1827 = vmatpush3.msra.mxu1 %v1340_v24  ;;  %1828 = vmatprep.mubr.msk.f32.mxu1 %vm2282_vm0, %v2283_v1 }
 0x62f   : > { %1829 = vmatmul.mubr.msk.f32.vlgmr.msra.gmra.mrb[12].mxu1 %vm758_vm2, %v1338_v25 }
 0x6fa   : > { %v1081_v32 = vpop.f32.mrb[8].mxu1 }
 0x6fb   : > { %1416 = vrot.lane.b32.xlu0 %v1081_v32, %s2287_s21  ;;  %v1810_v33 = vpop.f32.mrb[9].mxu1 }
 0x6fe   : > { %v1246_v34 = vpop.f32.mrb[10].mxu1 }
 0x6ff   : > { %1420 = vrot.lane.b32.xlu1 %v1246_v34, %s2288_s16  ;;  %v1820_v1 = vpop.f32.mrb[11].mxu1 }
 0x702   : > { %v1411_v35 = vpop.f32.mrb[12].mxu1 }
 0x703   : > { %1424 = vrot.lane.b32.xlu0 %v1411_v35, %s2289_s28  ;;  %v1830_v36 = vpop.f32.mrb[13].mxu1 }
 0x76d   : > { %v1417_v37 = vpop.permute.xlu0 %1416 }
 0x76e   : > { %v1427_v38 = vsel %vm758_vm2, %v2724_v55, %v1417_v37 }
 0x771   : > { %v1421_v0 = vpop.permute.xlu1 %1420 }
 0x772   : > { %v1429_v39 = vsel %vm1428_vm3, %v1427_v38, %v1421_v0 }
 0x775   : > { %v1425_v40 = vpop.permute.xlu0 %1424 }
 0x776   : > { %v1431_v41 = vsel %vm1430_vm4, %v1429_v39, %v1425_v40 }
 0x777   : > { %1840 = vmatmul.mubr.msk.f32.vlgmr.msra.gmra.mrb[8].mxu0 %vm532_vm1, %v1431_v41 }
 0x84a   : > { %v1507_v43 = vpop.f32.mrb[8].mxu0 }
 0x84b   : > { %v1508_v44 = vadd.f32 %v1716_v42, %v1507_v43  ;;  %v1841_v45 = vpop.f32.mrb[9].mxu0 }
 0x84d   : > { %1511 = vst.msk [vmem:[%s503_s29] sm:$0xff] %vm532_vm1, %v1508_v44 }
 0x84e   : > { %2205 = shalt.err (!%p2202_p4)
}
 0x84f   : > { %s2206_s17 = scalar_lea.hbm %s2758_s11, 128  ;;  %s2210_s7 = scalar_lea.hbm %s2879_s12, 256 }
 0x850   : > { %p2207_p10 = scmp.ne.s32.totalorder %s2758_s11, %s2206_s17  ;;  %p2211_p12 = scmp.lt.u32.totalorder %s2758_s11, %s2879_s12 }
 0x851   : > { %p2212_p0 = scmp.lt.u32.totalorder %s2210_s7, %s2206_s17  ;;  %p2214_p9 = scmp.lt.u32.totalorder %s2206_s17, %s2758_s11 }
 0x852   : > { %p2208_p3 = pnand %p2207_p10, %p2880_p13 }
 0x853   : > { %p2213_p7 = por %p2212_p0, %p2211_p12 }
 0x854   : > { %p2209_p8 = pneg %p2208_p3 }
 0x855   : > { %p2215_p11 = por %p2214_p9, %p2213_p7 }
 0x857   : > { %p2216_p1 = pnand %p2215_p11, %p2209_p8 }
 0x859   : > { %2219 = shalt.err (!%p2216_p1)
}
 0x85a   : > { %1888 = dma.vmem_to_hbm [thread:$0]  (%p2880_p13), %s2760_s20, 128, %s2758_s11, %s1513_s23  }
 0x85b PF: > { %s2881_s16 = sld [smem:[#allocation20_spill]]  ;;  %s2882_s28 = sld [smem:[#allocation25_spill]] }
 0x85c   : > { %s2883_s24 = sld [smem:[#allocation21_spill]] }
 0x861   : > { %s1538_s13 = sand.u32 1, %s2881_s16   ;;  %p2884_p6 = scmp.ne.s32.totalorder %s2882_s28, 0 }
 0x862   : > { %p2885_p5 = scmp.ge.s32.totalorder %s2883_s24, 2  ;;  %s1539_s30 = scalar_lea.sflag [#allocation4], %s1538_s13 }
 0x864   : > { %p1914_p2 = pnand %p2885_p5, %p2884_p6 }
 0x866   : > { %2253 = dma.done.wait (!%p1914_p2), %s1539_s30, 128  }
 0x867   : > { %2255 = vsyncadd (!%p1914_p2), %s1539_s30, 4294967168  ;;  %s2886_s16 = sld [smem:[#allocation22_spill]]  ;;  %s2887_s9 = sld [smem:[#allocation23_spill]] }
 0x868   : > { %s2888_s13 = smov %s2262_s14  ;;  %s2889_s14 = smov %s2266_s15 }
 0x86d   : > { %p28_p4 = scmp.ge.s32.totalorder %s2886_s16, 4   ;;  %s2890_s15 = smov %s2887_s9 }
 0x86f   :  { %30 = sbr.rel (!%p28_p4) target bundleno = 16 (0x10), region = 145 }
 0x876   :  { %1544 = vsyncpa [#allocation3], 1 }
 0x877   :  { %1546 = vsyncpa [#allocation3 + $0x1], 1 }
 0x878   :  { %1547 = vsyncpa [#allocation6], 1 }
 0x879   :  { %1549 = vsyncpa [#allocation6 + $0x1], 1 }
 0x87a   :  { %1550 = vsyncpa [#allocation9], 1 }
 0x87b   :  { %1551 = vsyncpa [#allocation12], 1 }
 0x87c   :  { %1552 = vsyncpa [#allocation4], 1 }
 0x87d   :  { %1554 = vsyncpa [#allocation4 + $0x1], 1 }

</bundles_post_ra>
